<compile_context>
chip_gen: v5e
topology: v5e:2x2
jax: 0.10.0
libtpu: 0.0.40
codegen_flags: <defaults>
</compile_context>

<pallas_src>
import math
import jax
import jax.numpy as jnp
from jax.experimental import pallas as pl
from jax.experimental.pallas import tpu as pltpu

_INV_SQRT2 = 1.0 / math.sqrt(2.0)


def _gelu_exact(x):
    # PyTorch nn.GELU() default is the exact erf formulation (EUP op on TPU).
    return 0.5 * x * (1.0 + jax.lax.erf(x * _INV_SQRT2))


def mlp_kernel(x_ref, w1_ref, w2_ref, o_ref):
    # x_ref : (C, TM)    spatial-token tile (tokens on lanes, channels on sublanes)
    # w1_ref: (Chid, C)  fc1 weight, squeezed PyTorch conv layout
    # w2_ref: (C, Chid)  fc2 weight, squeezed PyTorch conv layout
    # o_ref : (C, TM)
    h = jnp.dot(w1_ref[...], x_ref[...], preferred_element_type=jnp.float32)
    h = _gelu_exact(h)
    y = jnp.dot(w2_ref[...], h, preferred_element_type=jnp.float32)
    o_ref[...] = y.astype(o_ref.dtype)


def _pick_spatial_tile(HW, C, Chid, vmem_budget_bytes=16 << 20):
    # f32 bytes per spatial token resident per step:
    #   double-buffered x tile (2*C) + double-buffered out tile (2*C)
    #   + hidden activation between the two matmuls (Chid).
    bytes_per_token = 4 * (4 * C + Chid)
    tm = vmem_budget_bytes // max(bytes_per_token, 1)
    tm = min(tm, 2048)                       # diminishing returns past ~2K lanes
    if HW <= tm:
        return HW                            # full extent: always a legal block
    return max(128, (tm // 128) * 128)       # lane-dense multiple of 128


def mlp_pallas(x_nchw, w1, w2, *, tm_sp=None):
    """x_nchw: (N, C, H, W) float32
       w1    : (Chid, C, 1, 1)  fc1 weight (PyTorch conv layout)
       w2    : (C, Chid, 1, 1)  fc2 weight (PyTorch conv layout)
    """
    N, C, H, W = x_nchw.shape
    Chid = w1.shape[0]
    HW = H * W

    # Zero-cost reshape (keeps NCHW memory order); weights squeezed, NOT transposed.
    x = x_nchw.reshape(N, C, HW)
    w1_m = w1[:, :, 0, 0]   # (Chid, C)
    w2_m = w2[:, :, 0, 0]   # (C, Chid)

    if tm_sp is None:
        tm_sp = _pick_spatial_tile(HW, C, Chid)
    n_sp = pl.cdiv(HW, tm_sp)

    flops = 2 * 2 * N * HW * C * Chid          # two C x Chid matmuls per token
    bytes_accessed = 4 * (2 * N * C * HW + 2 * C * Chid)
    cost = pl.CostEstimate(flops=flops,
                           transcendentals=N * HW * Chid,   # erf per hidden act
                           bytes_accessed=bytes_accessed)

    out = pl.pallas_call(
        mlp_kernel,
        out_shape=jax.ShapeDtypeStruct((N, C, HW), x_nchw.dtype),
        grid=(N, n_sp),
        in_specs=[
            # batch dim squeezed; channels on sublanes, spatial tile on lanes
            pl.BlockSpec((None, C, tm_sp), lambda n, s: (n, 0, s)),
            # Tiny, grid-invariant weights: constant index_map so the DMA is not
            # re-issued per step.  (At very large channel counts, add a hidden-dim
            # reduction axis with a VMEM accumulator instead.)
            pl.BlockSpec((Chid, C), lambda n, s: (0, 0)),
            pl.BlockSpec((C, Chid), lambda n, s: (0, 0)),
        ],
        out_specs=pl.BlockSpec((None, C, tm_sp), lambda n, s: (n, 0, s)),
        compiler_params=pltpu.CompilerParams(
            # Both axes independent -> shard across the 2 TensorCores on v7x.
            dimension_semantics=("parallel", "parallel")),
        cost_estimate=cost,
    )(x, w1_m, w2_m)

    return out.reshape(N, C, H, W)


if __name__ == "__main__":
    # Small shapes consistent with the module: batch=2, channels=4, spatial=16.
    N, C, H, W = 2, 4, 16, 16
    ratio = 4
    Chid = C * ratio

    key = jax.random.PRNGKey(0)
    kx, k1, k2 = jax.random.split(key, 3)

    x = jax.random.normal(kx, (N, C, H, W), dtype=jnp.float32)
    # Deterministic synthetic weights, PyTorch conv layout (Cout, Cin, 1, 1).
    w1 = jax.random.normal(k1, (Chid, C, 1, 1), dtype=jnp.float32) * (1.0 / math.sqrt(C))
    w2 = jax.random.normal(k2, (C, Chid, 1, 1), dtype=jnp.float32) * (1.0 / math.sqrt(Chid))

    y = mlp_pallas(x, w1, w2)
    jax.block_until_ready(y)

    # Pure-JAX reference of the same forward pass (f32, exact-erf GELU).
    xr = x.reshape(N, C, H * W)
    href = _gelu_exact(jnp.einsum('oc,ncs->nos', w1[:, :, 0, 0], xr))
    yref = jnp.einsum('co,nos->ncs', w2[:, :, 0, 0], href).reshape(N, C, H, W)

    assert y.shape == (N, C, H, W)
    assert jnp.allclose(y, yref, atol=1e-4, rtol=1e-4)

    print("KERNEL_OK")
</pallas_src>

<mosaic_0001>
module attributes {stable_mosaic.version = 11 : i64} {
  func.func @mlp_kernel(%arg0: i32, %arg1: i32, %arg2: memref<1x4x256xf32, #tpu.memory_space<vmem>>, %arg3: memref<16x4xf32, #tpu.memory_space<vmem>>, %arg4: memref<4x16xf32, #tpu.memory_space<vmem>>, %arg5: memref<1x4x256xf32, #tpu.memory_space<vmem>>) attributes {dimension_semantics = [#tpu.dimension_semantics<parallel>, #tpu.dimension_semantics<parallel>], iteration_bounds = array<i64: 2, 1>, scalar_prefetch = 0 : i64, scratch_operands = 0 : i64, tpu.core_type = #tpu.core_type<tc>, window_params = [{transform_indices = @transform_0, window_bounds = array<i64: 1, 4, 256>}, {pipeline_mode = #tpu.pipeline_mode<synchronous>, transform_indices = @transform_1, window_bounds = array<i64: 16, 4>}, {pipeline_mode = #tpu.pipeline_mode<synchronous>, transform_indices = @transform_2, window_bounds = array<i64: 4, 16>}, {transform_indices = @transform_3, window_bounds = array<i64: 1, 4, 256>}]} {
    %c0 = arith.constant 0 : index
    %c0_0 = arith.constant 0 : index
    %0 = vector.load %arg3[%c0, %c0_0] : memref<16x4xf32, #tpu.memory_space<vmem>>, vector<16x4xf32>
    %c0_1 = arith.constant 0 : index
    %c0_2 = arith.constant 0 : index
    %c0_3 = arith.constant 0 : index
    %1 = vector.load %arg2[%c0_1, %c0_2, %c0_3] : memref<1x4x256xf32, #tpu.memory_space<vmem>>, vector<1x4x256xf32>
    %2 = vector.shape_cast %1 : vector<1x4x256xf32> to vector<4x256xf32>
    %cst = arith.constant dense<0.000000e+00> : vector<16x256xf32>
    %3 = tpu.matmul %0, %2, %cst {dimension_numbers = #tpu.dot_dimension_numbers<[1], [0], [0], [1], [0, 0, 1, 1], [], []>} : vector<16x4xf32>, vector<4x256xf32>, vector<16x256xf32> -> vector<16x256xf32>
    %cst_4 = arith.constant 5.000000e-01 : f32
    %4 = vector.broadcast %cst_4 : f32 to vector<16x256xf32>
    %5 = arith.mulf %4, %3 : vector<16x256xf32>
    %cst_5 = arith.constant 0.707106769 : f32
    %6 = vector.broadcast %cst_5 : f32 to vector<16x256xf32>
    %7 = arith.mulf %3, %6 : vector<16x256xf32>
    %8 = math.erf %7 : vector<16x256xf32>
    %cst_6 = arith.constant 1.000000e+00 : f32
    %9 = vector.broadcast %cst_6 : f32 to vector<16x256xf32>
    %10 = arith.addf %9, %8 : vector<16x256xf32>
    %11 = arith.mulf %5, %10 : vector<16x256xf32>
    %c0_7 = arith.constant 0 : index
    %c0_8 = arith.constant 0 : index
    %12 = vector.load %arg4[%c0_7, %c0_8] : memref<4x16xf32, #tpu.memory_space<vmem>>, vector<4x16xf32>
    %cst_9 = arith.constant dense<0.000000e+00> : vector<4x256xf32>
    %13 = tpu.matmul %12, %11, %cst_9 {dimension_numbers = #tpu.dot_dimension_numbers<[1], [0], [0], [1], [0, 0, 1, 1], [], []>} : vector<4x16xf32>, vector<16x256xf32>, vector<4x256xf32> -> vector<4x256xf32>
    %c0_10 = arith.constant 0 : index
    %c0_11 = arith.constant 0 : index
    %c0_12 = arith.constant 0 : index
    %14 = vector.load %arg5[%c0_10, %c0_11, %c0_12] : memref<1x4x256xf32, #tpu.memory_space<vmem>>, vector<1x4x256xf32>
    %15 = vector.shape_cast %14 : vector<1x4x256xf32> to vector<4x256xf32>
    %16 = vector.shape_cast %13 : vector<4x256xf32> to vector<1x4x256xf32>
    tpu.vector_store %arg5[%c0_10, %c0_11, %c0_12], %16 {strides = array<i32>} : memref<1x4x256xf32, #tpu.memory_space<vmem>>, vector<1x4x256xf32>,
    return
  }
  func.func @transform_0(%arg0: i32, %arg1: i32) -> (i32, i32, i32) {
    %c0_i32 = arith.constant 0 : i32
    %c0_i32_0 = arith.constant 0 : i32
    return %arg0, %c0_i32, %arg1 : i32, i32, i32
  }
  func.func @transform_1(%arg0: i32, %arg1: i32) -> (i32, i32) {
    %c0_i32 = arith.constant 0 : i32
    %c0_i32_0 = arith.constant 0 : i32
    %c0_i32_1 = arith.constant 0 : i32
    return %c0_i32, %c0_i32_0 : i32, i32
  }
  func.func @transform_2(%arg0: i32, %arg1: i32) -> (i32, i32) {
    %c0_i32 = arith.constant 0 : i32
    %c0_i32_0 = arith.constant 0 : i32
    %c0_i32_1 = arith.constant 0 : i32
    return %c0_i32, %c0_i32_0 : i32, i32
  }
  func.func @transform_3(%arg0: i32, %arg1: i32) -> (i32, i32, i32) {
    %c0_i32 = arith.constant 0 : i32
    %c0_i32_0 = arith.constant 0 : i32
    return %arg0, %c0_i32, %arg1 : i32, i32, i32
  }
}

</mosaic_0001>

<bundles_post_ra>
// kernel: tpu_custom_call.1
= control target key start
LH: loop header
LB: loop body
LE: loop exit
PB: predicated region body
PF: predicated region fallthrough
CT: control target
= control target key end

     0   :  { %8 = vsyncpa [#allocation3], 0  ;;  %s998_s0 = inlined_call_operand.vmem [shape: f32[2,4,256], index: 0, kind: input, shape index: {}]   ;;  %s999_s1 = inlined_call_operand.vmem [shape: f32[16,4], index: 1, kind: input, shape index: {}]   ;;  %s1000_s2 = inlined_call_operand.vmem [shape: f32[4,16], index: 2, kind: input, shape index: {}]   ;;  %s1001_s3 = inlined_call_operand.hbm [shape: f32[2,4,256], index: 3, kind: output, shape index: {}]  }
   0x1   :  { %10 = vsyncpa [#allocation3 + $0x1], 0  ;;  %s777_s12 = smov 0   ;;  %s779_s13 = smov 0  }
   0x2   :  { %s781_s14 = smov 0   ;;  %s783_s15 = smov 0  }
   0x3   :  { %s785_s16 = smov 0   ;;  %s787_s17 = smov 0  }
   0x4 LB: > { %s587_s18 = sadd.s32 4294967295, %s755_s17   ;;  %s588_s19 = sadd.s32 4294967294, %s755_s17   ;;  %s755_s17 = sphi %s787_s17, %s16_s17   ;;  %s751_s16 = sphi %s785_s16, %s1012_s16   ;;  %s747_s15 = sphi %s783_s15, %s1011_s15   ;;  %s743_s14 = sphi %s781_s14, %s1010_s14   ;;  %s739_s13 = sphi %s779_s13, %s1009_s13   ;;  %s735_s12 = sphi %s777_s12, %s1008_s12  }
   0x5   : > { %s28_s20 = sadd.s32 1, %s751_s16  ;;  %s107_s21 = sadd.s32 1, %s743_s14 }
   0x6   : > { %p30_p0 = scmp.ge.s32.totalorder %s28_s20, 2  ;;  %p117_p1 = scmp.ne.s32.totalorder %s743_s14, %s739_s13 }
   0x7   : > { %p118_p2 = scmp.eq.s32.totalorder %s587_s18, 1  ;;  %p123_p3 = scmp.ne.s32.totalorder %s739_s13, %s735_s12 }
   0x8   : > { %s1014_s20 = smov (%p30_p0, %s28_s20), 0  ;;  %p124_p5 = scmp.eq.s32.totalorder %s588_s19, 1 }
   0x9   : > { %p817_p4 = por %p118_p2, %p117_p1  ;;  %s102_s23 = ssub.s32 %s751_s16, %s1014_s20 }
   0xa   : > { %p591_p6 = scmp.ge.s32.totalorder %s755_s17, 1  ;;  %p105_p7 = scmp.eq.s32.totalorder %s102_s23, 0 }
   0xb   : > { %p824_p8 = por %p124_p5, %p123_p3  ;;  %p161_p9 = scmp.lt.s32.totalorder %s755_s17, 3 }
   0xc   : > { %s830_s25 = scalar_select %p105_p7, %s743_s14, %s107_s21  }
   0xd   : > { %p162_p10 = pnand %p591_p6, %p161_p9 }
   0xe   : > { %p190_p11 = scmp.lt.s32.totalorder (!%p162_p10), %s747_s15, 1  ;;  %s186_s10 = sand.u32 (!%p162_p10), 1, %s739_s13  }
   0xf   : > { %165 = sbr.rel (%p162_p10) target bundleno = 361 (0x169), region = 32  ;;  %s592_s11 = sshll.u32 (!%p162_p10), %s186_s10, 3 }
  0x10   : > { %s613_s18 = sshll.u32 (!%p162_p10), %s747_s15, 3  ;;  %s493_s29 = scalar_lea.sflag (!%p162_p10), [#allocation3], %s186_s10 }
  0x11   : > { %s506_s23 = scalar_lea.hbm (!%p162_p10), %s1001_s3, %s613_s18  ;;  %s697_s6 = scalar_lea.hbm (!%p162_p10), %s1001_s3, 16 }
  0x12   : > { %s510_s28 = sshll.u32 (!%p162_p10), %s506_s23, 4  ;;  %s511_s28 = int_to_ptr.hbm [resolvable:$true] %s510_s28 }
  0x14   : > { %s191_s26 = scalar_select %p190_p11, %s747_s15, 1  ;;  %vm214_vm0 = vcmask 1043456   ;;  %v200_v1 = vld [vmem:[%s999_s1] sm:$0xff]  ;;  %vm207_vm1 = vcmask 31744   ;;  %v201_v4 = vld [vmem:[%s999_s1 + $0x8] sm:$0xff] }
  0x16   : > { %s612_s27 = sshll.u32 %s191_s26, 3  ;;  %s188_s26 = scalar_lea.vmem [#allocation2], %s592_s11 }
  0x17   : > { %s197_s30 = scalar_lea.vmem %s998_s0, %s612_s27  ;;  %s508_s27 = sshll.u32 %s188_s26, 4  ;;  %s509_s27 = int_to_ptr.vmem [resolvable:$true] %s508_s27 }
  0x18   : > { %v202_v0 = vld [vmem:[%s197_s30] sm:$0xff]  ;;  %s691_s30 = sshra.s32 %s511_s28, 4  ;;  %s692_s30 = int_to_ptr.hbm [resolvable:$true] %s691_s30 }
  0x19   : > { %204 = vst [vmem:[#allocation1] ss:$2 sm:$0xff] %v202_v0  ;;  %s693_s15 = scalar_lea.hbm %s692_s30, 8  ;;  %p698_p1 = scmp.lt.s32.totalorder %s692_s30, %s1001_s3 }
  0x1a   : > { %p694_p12 = scmp.ne.s32.totalorder %s692_s30, %s693_s15  ;;  %p699_p2 = scmp.lt.s32.totalorder %s697_s6, %s693_s15 }
  0x1c   : > { %p695_p13 = pnand %p694_p12, %p817_p4  ;;  %p700_p3 = por %p699_p2, %p698_p1 }
  0x1e   : > { %p696_p0 = pneg %p695_p13 }
  0x20   : > { %v205_v2 = vld.sshfl [vmem:[#allocation1] sm:$0xff pattern:$0x75316420]  ;;  %v206_v3 = vld.sshfl [vmem:[#allocation1 + $0x8] sm:$0xff pattern:$0x75316420]  ;;  %p701_p5 = pnand %p700_p3, %p696_p0 }
  0x21   : > { %595 = vmatpush.msk.msra.mxu0 %vm214_vm0, %v205_v2  ;;  %598 = vmatpush.msk.msra.mxu1 %vm214_vm0, %v206_v3 }
  0x22   : > { %596 = vmatmul.msk.f32.vlgmr.msra.gmra.mxu0 %vm207_vm1, %v200_v1  ;;  %599 = vmatmul.msk.f32.vlgmr.msra.gmra.mxu1 %vm207_vm1, %v200_v1 }
  0x2a   : > { %597 = vmatmul.msk.f32.gmra.mxu0 %vm207_vm1, %v201_v4  ;;  %600 = vmatmul.msk.f32.gmra.mxu1 %vm207_vm1, %v201_v4 }
  0x9f   : > { %v845_v5 = vpop.f32.mrf.mxu0  ;;  %v847_v6 = vpop.f32.mrf.mxu1 }
  0xa0   : > { %v850_v7 = vmul.f32 0.70710677, %v845_v5  ;;  %v853_v8 = vmul.f32 0.70710677, %v847_v6 }
  0xa2   : > { %v273_v9 = vmul.f32 %v850_v7, %v850_v7  ;;  %v313_v10 = vmul.f32 %v853_v8, %v853_v8 }
  0xa4   : > { %v859_v11 = vmin.f32 %v273_v9, 16.0  ;;  %v861_v12 = vmin.f32 %v313_v10, 16.0 }
  0xa6   : > { %v275_v13 = vmul.f32 2.1237322e-06, %v859_v11  ;;  %v315_v14 = vmul.f32 2.1237322e-06, %v861_v12  ;;  %v286_v15 = vmul.f32 3.8918573e-05, %v859_v11 }
  0xa7   : > { %v866_v16 = vpop.f32.mrf.mxu0  ;;  %v868_v17 = vpop.f32.mrf.mxu1  ;;  %v326_v18 = vmul.f32 3.8918573e-05, %v861_v12 }
  0xa8   : > { %v276_v19 = vadd.f32 0.00028619796, %v275_v13  ;;  %v316_v20 = vadd.f32 0.00028619796, %v315_v14  ;;  %v872_v21 = vmul.f32 0.70710677, %v866_v16 }
  0xa9   : > { %v875_v22 = vmul.f32 0.70710677, %v868_v17  ;;  %v287_v23 = vadd.f32 0.001143296, %v286_v15  ;;  %v327_v26 = vadd.f32 0.001143296, %v326_v18 }
  0xaa   : > { %v277_v24 = vmul.f32 %v276_v19, %v859_v11  ;;  %v317_v25 = vmul.f32 %v316_v20, %v861_v12  ;;  %v353_v27 = vmul.f32 %v872_v21, %v872_v21 }
  0xab   : > { %v393_v28 = vmul.f32 %v875_v22, %v875_v22  ;;  %v288_v29 = vmul.f32 %v287_v23, %v859_v11  ;;  %v328_v32 = vmul.f32 %v327_v26, %v861_v12 }
  0xac   : > { %v278_v30 = vadd.f32 0.0036580483, %v277_v24  ;;  %v318_v31 = vadd.f32 0.0036580483, %v317_v25  ;;  %v885_v33 = vmin.f32 %v353_v27, 16.0 }
  0xad   : > { %v887_v34 = vmin.f32 %v393_v28, 16.0  ;;  %v289_v35 = vadd.f32 0.014752088, %v288_v29  ;;  %v329_v38 = vadd.f32 0.014752088, %v328_v32 }
  0xae   : > { %v279_v36 = vmul.f32 %v278_v30, %v859_v11  ;;  %v319_v37 = vmul.f32 %v318_v31, %v861_v12  ;;  %v355_v39 = vmul.f32 2.1237322e-06, %v885_v33  ;;  %v366_v41 = vmul.f32 3.8918573e-05, %v885_v33 }
  0xaf   : > { %v395_v40 = vmul.f32 2.1237322e-06, %v887_v34  ;;  %v290_v42 = vmul.f32 %v289_v35, %v859_v11  ;;  %v406_v44 = vmul.f32 3.8918573e-05, %v887_v34  ;;  %v330_v45 = vmul.f32 %v329_v38, %v861_v12 }
  0xb0   : > { %v280_v43 = vadd.f32 0.05243302, %v279_v36  ;;  %v356_v46 = vadd.f32 0.00028619796, %v355_v39  ;;  %v367_v48 = vadd.f32 0.001143296, %v366_v41 }
  0xb1   : > { %v396_v47 = vadd.f32 0.00028619796, %v395_v40  ;;  %v320_v49 = vadd.f32 0.05243302, %v319_v37  ;;  %v407_v50 = vadd.f32 0.001143296, %v406_v44 }
  0xb2   : > { %v291_v51 = vadd.f32 0.112945676, %v290_v42  ;;  %v357_v52 = vmul.f32 %v356_v46, %v885_v33  ;;  %v368_v54 = vmul.f32 %v367_v48, %v885_v33  ;;  %v331_v55 = vadd.f32 0.112945676, %v330_v45 }
  0xb3   : > { %v397_v53 = vmul.f32 %v396_v47, %v887_v34  ;;  %v281_v56 = vmul.f32 %v280_v43, %v859_v11  ;;  %v408_v57 = vmul.f32 %v407_v50, %v887_v34  ;;  %v321_v63 = vmul.f32 %v320_v49, %v861_v12 }
  0xb4   : > { %v292_v58 = vmul.f32 %v291_v51, %v859_v11  ;;  %v358_v59 = vadd.f32 0.0036580483, %v357_v52  ;;  %v369_v61 = vadd.f32 0.014752088, %v368_v54  ;;  %v332_v62 = vmul.f32 %v331_v55, %v861_v12 }
  0xb5   : > { %v398_v60 = vadd.f32 0.0036580483, %v397_v53  ;;  %v409_v0 = vadd.f32 0.014752088, %v408_v57  ;;  %v282_v14 = vadd.f32 0.18741608, %v281_v56 }
  0xb6   : > { %v293_v1 = vadd.f32 0.4994258, %v292_v58  ;;  %v359_v2 = vmul.f32 %v358_v59, %v885_v33  ;;  %v370_v4 = vmul.f32 %v369_v61, %v885_v33  ;;  %v333_v9 = vadd.f32 0.4994258, %v332_v62 }
  0xb7   : > { %v399_v3 = vmul.f32 %v398_v60, %v887_v34  ;;  %v410_v10 = vmul.f32 %v409_v0, %v887_v34  ;;  %v322_v24 = vadd.f32 0.18741608, %v321_v63  ;;  %v283_v30 = vmul.f32 %v282_v14, %v859_v11 }
  0xb8   : > { %v294_v13 = vmul.f32 %v293_v1, %v859_v11  ;;  %v371_v15 = vadd.f32 0.112945676, %v370_v4  ;;  %v334_v18 = vmul.f32 %v333_v9, %v861_v12  ;;  %v360_v19 = vadd.f32 0.05243302, %v359_v2 }
  0xb9   : > { %v411_v20 = vadd.f32 0.112945676, %v410_v10  ;;  %v400_v25 = vadd.f32 0.05243302, %v399_v3  ;;  %v323_v35 = vmul.f32 %v322_v24, %v861_v12  ;;  %v284_v41 = vadd.f32 1.1283791, %v283_v30 }
  0xba   : > { %v295_v23 = vadd.f32 1.0, %v294_v13  ;;  %v372_v26 = vmul.f32 %v371_v15, %v885_v33  ;;  %v335_v27 = vadd.f32 1.0, %v334_v18  ;;  %v361_v31 = vmul.f32 %v360_v19, %v885_v33 }
  0xbb   : > { %v412_v28 = vmul.f32 %v411_v20, %v887_v34  ;;  %v401_v36 = vmul.f32 %v400_v25, %v887_v34  ;;  %v324_v11 = vadd.f32 1.1283791, %v323_v35  ;;  %v285_v48 = vmul.f32 %v284_v41, %v850_v7 }
  0xbc   : > { %669 = vrcp.f32 %v295_v23  ;;  %v373_v29 = vadd.f32 0.4994258, %v372_v26  ;;  %v362_v42 = vadd.f32 0.18741608, %v361_v31  ;;  %v305_v12 = vand.u32 2147483647, %v295_v23 }
  0xbd   : > { %671 = vrcp.f32 %v335_v27  ;;  %v413_v32 = vadd.f32 0.4994258, %v412_v28  ;;  %v402_v45 = vadd.f32 0.18741608, %v401_v36  ;;  %v307_v47 = vand.u32 2147483648, %v295_v23 }
  0xbe   : > { %v374_v37 = vmul.f32 %v373_v29, %v885_v33  ;;  %v363_v49 = vmul.f32 %v362_v42, %v885_v33  ;;  %v325_v51 = vmul.f32 %v324_v11, %v853_v8  ;;  %v345_v54 = vand.u32 2147483647, %v335_v27 }
  0xbf   : > { %v414_v38 = vmul.f32 %v413_v32, %v887_v34  ;;  %v403_v52 = vmul.f32 %v402_v45, %v887_v34  ;;  %vm301_vm2 = vweird.f32 %v295_v23  ;;  %vm929_vm3 = vcmp.eq.f32.partialorder %v305_v12, 8.507059e+37 }
  0xc0   : > { %v919_v39 = vadd.f32 1.0, %v374_v37  ;;  %v347_v57 = vand.u32 2147483648, %v335_v27  ;;  %v308_v7 = vor.u32 1.1754944e-38, %v307_v47  ;;  %vm341_vm5 = vweird.f32 %v335_v27 }
  0xc1   : > { %v921_v43 = vadd.f32 1.0, %v414_v38  ;;  %v364_v60 = vadd.f32 1.1283791, %v363_v49  ;;  %v404_v34 = vadd.f32 1.1283791, %v403_v52  ;;  %vm935_vm7 = vcmp.eq.f32.partialorder %v345_v54, 8.507059e+37 }
  0xc2   : > { %v670_v40 = vpop.eup %669  ;;  %673 = vrcp.f32 %v919_v39  ;;  %v385_v2 = vand.u32 2147483647, %v919_v39  ;;  %v348_v4 = vor.u32 1.1754944e-38, %v347_v57  ;;  %v387_v9 = vand.u32 2147483648, %v919_v39 }
  0xc3   : > { %v672_v44 = vpop.eup %671  ;;  %675 = vrcp.f32 %v921_v43  ;;  %v297_v46 = vmul.f32 %v670_v40, %v295_v23  ;;  %vm302_vm4 = vweird.f32 %v670_v40  ;;  %v427_v13 = vand.u32 2147483648, %v921_v43 }
  0xc4   : > { %v337_v50 = vmul.f32 %v672_v44, %v335_v27  ;;  %vm342_vm6 = vweird.f32 %v672_v44  ;;  %vm303_vm8 = vmor %vm301_vm2, %vm302_vm4  ;;  %v425_v23 = vand.u32 2147483647, %v921_v43  ;;  %vm381_vm12 = vweird.f32 %v919_v39 }
  0xc5   : > { %v298_v53 = vsub.f32 1.0, %v297_v46  ;;  %vm343_vm9 = vmor %vm341_vm5, %vm342_vm6  ;;  %v388_v27 = vor.u32 1.1754944e-38, %v387_v9  ;;  %vm421_vm14 = vweird.f32 %v921_v43  ;;  %v365_v30 = vmul.f32 %v364_v60, %v872_v21 }
  0xc6   : > { %v338_v56 = vsub.f32 1.0, %v337_v50  ;;  %vm386_vm15 = vcmp.eq.f32.partialorder %v385_v2, 8.507059e+37  ;;  %v428_v32 = vor.u32 1.1754944e-38, %v427_v13  ;;  %v405_v35 = vmul.f32 %v404_v34, %v875_v22 }
  0xc7   : > { %v299_v59 = vmul.f32 %v670_v40, %v298_v53  ;;  %vm426_vm2 = vcmp.eq.f32.partialorder %v425_v23, 8.507059e+37  ;;  %v268_v12 = vmul.f32 0.5, %v868_v17  ;;  %v265_v22 = vmul.f32 0.5, %v845_v5 }
  0xc8   : > { %v674_v58 = vpop.eup %673  ;;  %v339_v61 = vmul.f32 %v672_v44, %v338_v56  ;;  %v266_v49 = vmul.f32 0.5, %v847_v6 }
  0xc9   : > { %v676_v33 = vpop.eup %675  ;;  %v377_v8 = vmul.f32 %v674_v58, %v919_v39  ;;  %v300_v63 = vadd.f32 %v670_v40, %v299_v59  ;;  %vm382_vm10 = vweird.f32 %v674_v58 }
  0xca   : > { %v417_v62 = vmul.f32 %v676_v33, %v921_v43  ;;  %v340_v3 = vadd.f32 %v672_v44, %v339_v61  ;;  %vm422_vm11 = vweird.f32 %v676_v33  ;;  %vm383_vm13 = vmor %vm381_vm12, %vm382_vm10  ;;  %v267_v43 = vmul.f32 0.5, %v866_v16  ;;  %v441_v16 = vld [vmem:[%s1000_s2] sm:$0xf] }
  0xcb   : > { %v378_v1 = vsub.f32 1.0, %v377_v8  ;;  %v304_v14 = vsel %vm303_vm8, %v670_v40, %v300_v63  ;;  %vm423_vm1 = vmor %vm421_vm14, %vm422_vm11 }
  0xcc   : > { %v418_v10 = vsub.f32 1.0, %v417_v62  ;;  %v309_v18 = vsel %vm929_vm3, %v308_v7, %v304_v14  ;;  %v344_v19 = vsel %vm343_vm9, %v672_v44, %v340_v3  ;;  %vm442_vm3 = vcmask 130048  }
  0xcd   : > { %v379_v15 = vmul.f32 %v674_v58, %v378_v1  ;;  %v349_v24 = vsel %vm935_vm7, %v348_v4, %v344_v19  ;;  %v310_v26 = vmul.f32 %v309_v18, %v285_v48 }
  0xce   : > { %v419_v20 = vmul.f32 %v676_v33, %v418_v10  ;;  %v350_v29 = vmul.f32 %v349_v24, %v325_v51 }
  0xcf   : > { %v380_v25 = vadd.f32 %v674_v58, %v379_v15  ;;  %v601_v40 = vclamps-f32 %v310_v26, 1.0 }
  0xd0   : > { %v420_v28 = vadd.f32 %v676_v33, %v419_v20  ;;  %v602_v42 = vclamps-f32 %v350_v29, 1.0 }
  0xd1   : > { %v384_v31 = vsel %vm383_vm13, %v674_v58, %v380_v25  ;;  %v433_v21 = vadd.f32 1.0, %v601_v40 }
  0xd2   : > { %v389_v36 = vsel %vm386_vm15, %v388_v27, %v384_v31  ;;  %v424_v37 = vsel %vm423_vm1, %v676_v33, %v420_v28  ;;  %v434_v47 = vadd.f32 1.0, %v602_v42 }
  0xd3   : > { %v390_v38 = vmul.f32 %v389_v36, %v365_v30  ;;  %v429_v39 = vsel %vm426_vm2, %v428_v32, %v424_v37  ;;  %v437_v51 = vmul.f32 %v433_v21, %v265_v22 }
  0xd4   : > { %v430_v41 = vmul.f32 %v429_v39, %v405_v35  ;;  %v438_v52 = vmul.f32 %v434_v47, %v266_v49 }
  0xd5   : > { %v603_v44 = vclamps-f32 %v390_v38, 1.0 }
  0xd6   : > { %v604_v11 = vclamps-f32 %v430_v41, 1.0 }
  0xd7   : > { %v435_v45 = vadd.f32 1.0, %v603_v44 }
  0xd8   : > { %v436_v46 = vadd.f32 1.0, %v604_v11 }
  0xd9   : > { %v439_v48 = vmul.f32 %v435_v45, %v267_v43 }
  0xda   : > { %v440_v50 = vmul.f32 %v436_v46, %v268_v12 }
  0xdb   : > { %460 = vmatpush.msra.mxu2 %v439_v48 }
  0xdc   : > { %480 = vmatpush.msra.mxu3 %v440_v50 }
  0xdd   : > { %461 = vmatpush.msra.mxu2 %v437_v51 }
  0xde   : > { %481 = vmatpush.msra.mxu3 %v438_v52  ;;  %605 = vmatmul.msk.f32.vlgmr.msra.gmra.mxu2 %vm442_vm3, %v441_v16 }
  0xdf   : > { %606 = vmatmul.msk.f32.vlgmr.msra.gmra.mxu3 %vm442_vm3, %v441_v16 }
 0x161   : > { %v463_v6 = vpop.f32.mrf.mxu2 }
 0x162   : > { %v483_v5 = vpop.f32.mrf.mxu3 }
 0x163   : > { %v488_v17 = vrot.slane %v483_v5, 4 }
 0x165   : > { %v489_v53 = vsel %vm214_vm0, %v463_v6, %v488_v17 }
 0x166   : > { %491 = vst [vmem:[%s188_s26] sm:$0xff] %v489_v53 }
 0x167   : > { %704 = shalt.err (!%p701_p5)
}
 0x168   : > { %614 = dma.vmem_to_hbm [thread:$0]  (%p817_p4), %s509_s27, 128, %s511_s28, %s493_s29  }
 0x169 PF: > { %p620_p6 = scmp.ge.s32.totalorder %s755_s17, 2  ;;  %s522_s9 = sand.u32 1, %s735_s12  }
 0x16a   : > { %s523_s10 = scalar_lea.sflag [#allocation3], %s522_s9 }
 0x16b   : > { %p617_p7 = pnand %p620_p6, %p824_p8 }
 0x16d   : > { %p618_p9 = pneg %p617_p7 }
 0x16f   : > { %730 = dma.done.wait (%p618_p9), %s523_s10, 128  }
 0x170   : > { %732 = vsyncadd (%p618_p9), %s523_s10, 4294967168  ;;  %s16_s17 = sadd.s32 1, %s755_s17   ;;  %s1008_s12 = smov %s739_s13 }
 0x171   : > { %p13_p10 = scmp.ge.s32.totalorder %s16_s17, 4   ;;  %s1009_s13 = smov %s743_s14 }
 0x172   : > { %s1010_s14 = smov %s830_s25  ;;  %s1011_s15 = smov %s751_s16 }
 0x173   : > { %s1012_s16 = smov %s1014_s20  ;;  %15 = sbr.rel (!%p13_p10) target bundleno = 4 (0x4), region = 67 }
 0x178   :  { %529 = vsyncpa [#allocation3], 1 }
 0x179   :  { %531 = vsyncpa [#allocation3 + $0x1], 1 }

</bundles_post_ra>
